<compile_context>
chip_gen: v7x
topology: tpu7x:2x2x1
jax: 0.10.0
libtpu: 0.0.40
codegen_flags: <defaults>
</compile_context>

<pallas_src>
import math
import functools

import jax
import jax.numpy as jnp
from jax import lax
from jax.experimental import pallas as pl
from jax.experimental.pallas import tpu as pltpu


_VMEM_LIMIT = 48 * 1024 * 1024  # headroom; safe on v5e/v6e (128 MiB) and v7x (64 MiB)


def _pick_tile(dim, target):
    """Largest power-of-two tile <= target (>=128) dividing dim, else full dim."""
    if dim <= target:
        return dim
    t = target
    while t >= 128:
        if dim % t == 0:
            return t
        t //= 2
    return dim  # full dim always satisfies the block-shape constraint


# ----------------------------------------------------------------------------
# Kernel 1: tiled dense layer   out = x @ W + b   (W stored as (E_in, E_out))
# ----------------------------------------------------------------------------
def _linear_kernel(x_ref, w_ref, b_ref, o_ref, acc_ref):
    k = pl.program_id(2)

    @pl.when(k == 0)
    def _():
        acc_ref[...] = jnp.zeros_like(acc_ref)

    acc_ref[...] += jnp.dot(x_ref[...], w_ref[...],
                            preferred_element_type=jnp.float32)

    @pl.when(k == pl.num_programs(2) - 1)
    def _():
        o_ref[...] = (acc_ref[...] + b_ref[...]).astype(o_ref.dtype)


def linear(x2d, w, b, *, tm=256, tn=256, tk=512):
    """x2d: (M, K), w: (K, N) pre-transposed, b: (N,) -> (M, N)."""
    M, K = x2d.shape
    K2, N = w.shape
    assert K == K2
    tm = _pick_tile(M, tm)
    tn = _pick_tile(N, tn)
    tk = _pick_tile(K, tk)
    b2d = b.reshape(1, N)
    grid = (M // tm, N // tn, K // tk)
    return pl.pallas_call(
        _linear_kernel,
        out_shape=jax.ShapeDtypeStruct((M, N), x2d.dtype),
        grid=grid,
        in_specs=[
            pl.BlockSpec((tm, tk), lambda i, j, k: (i, k)),
            pl.BlockSpec((tk, tn), lambda i, j, k: (k, j)),
            pl.BlockSpec((1, tn), lambda i, j, k: (0, j)),
        ],
        out_specs=pl.BlockSpec((tm, tn), lambda i, j, k: (i, j)),
        scratch_shapes=[pltpu.VMEM((tm, tn), jnp.float32)],
        compiler_params=pltpu.CompilerParams(
            dimension_semantics=("parallel", "parallel", "arbitrary"),
            vmem_limit_bytes=_VMEM_LIMIT),
    )(x2d, w, b2d)


# ----------------------------------------------------------------------------
# Kernel 2: flash attention (online softmax), one (batch*head) per grid row
#   q is pre-scaled by 1/sqrt(d) (folded into the Q projection weights)
# ----------------------------------------------------------------------------
def _flash_kernel(q_ref, k_ref, v_ref, o_ref, m_sc, l_sc, acc_sc):
    ki = pl.program_id(2)

    @pl.when(ki == 0)
    def _():
        m_sc[...] = jnp.full_like(m_sc, -jnp.inf)
        l_sc[...] = jnp.zeros_like(l_sc)
        acc_sc[...] = jnp.zeros_like(acc_sc)

    q = q_ref[0]                                   # (tq, d)
    k = k_ref[0]                                   # (tk, d)
    v = v_ref[0]                                   # (tk, d)

    # q @ k^T without an explicit transpose: contract both last dims on the MXU.
    s = lax.dot_general(q, k, (((1,), (1,)), ((), ())),
                        preferred_element_type=jnp.float32)      # (tq, tk)

    m_prev = m_sc[...]
    m_new = jnp.maximum(m_prev, s.max(axis=-1, keepdims=True))
    alpha = jnp.exp(m_prev - m_new)
    p = jnp.exp(s - m_new)
    l_sc[...] = alpha * l_sc[...] + p.sum(axis=-1, keepdims=True)
    acc_sc[...] = alpha * acc_sc[...] + jnp.dot(
        p.astype(v.dtype), v, preferred_element_type=jnp.float32)
    m_sc[...] = m_new

    @pl.when(ki == pl.num_programs(2) - 1)
    def _():
        inv_l = pl.reciprocal(l_sc[...], approx=True)            # EUP slot
        o_ref[0] = (acc_sc[...] * inv_l).astype(o_ref.dtype)


def flash_attention(q, k, v, *, tq=256, tk=512):
    """q: (BH, Sq, d), k/v: (BH, Sk, d) -> (BH, Sq, d)."""
    BH, Sq, d = q.shape
    Sk = k.shape[1]
    tq = _pick_tile(Sq, tq)
    tk = _pick_tile(Sk, tk)
    grid = (BH, Sq // tq, Sk // tk)
    return pl.pallas_call(
        _flash_kernel,
        out_shape=jax.ShapeDtypeStruct((BH, Sq, d), q.dtype),
        grid=grid,
        in_specs=[
            pl.BlockSpec((1, tq, d), lambda b, qi, ki: (b, qi, 0)),
            pl.BlockSpec((1, tk, d), lambda b, qi, ki: (b, ki, 0)),
            pl.BlockSpec((1, tk, d), lambda b, qi, ki: (b, ki, 0)),
        ],
        out_specs=pl.BlockSpec((1, tq, d), lambda b, qi, ki: (b, qi, 0)),
        scratch_shapes=[
            pltpu.VMEM((tq, 1), jnp.float32),    # running max
            pltpu.VMEM((tq, 1), jnp.float32),    # running denom
            pltpu.VMEM((tq, d), jnp.float32),    # output accumulator
        ],
        compiler_params=pltpu.CompilerParams(
            dimension_semantics=("parallel", "parallel", "arbitrary"),
            vmem_limit_bytes=_VMEM_LIMIT),
    )(q, k, v)


# ----------------------------------------------------------------------------
# Module: parameter init + forward
# ----------------------------------------------------------------------------
def init_mha_params(key, embed_size):
    """nn.Linear-style U(-1/sqrt(in), 1/sqrt(in)); weights stored (E_in, E_out)."""
    params = {}
    bound = 1.0 / math.sqrt(embed_size)
    names = ["fc_queries", "fc_keys", "fc_values", "fc_out"]
    keys = jax.random.split(key, 2 * len(names))
    for i, name in enumerate(names):
        w = jax.random.uniform(keys[2 * i], (embed_size, embed_size),
                               jnp.float32, -bound, bound)
        b = jax.random.uniform(keys[2 * i + 1], (embed_size,),
                               jnp.float32, -bound, bound)
        params[name] = (w, b)
    return params


def multi_head_attention(params, query, key, value, heads):
    """query: (N, Sq, E), key/value: (N, Sk, E) -> (N, Sq, E)."""
    N, Sq, E = query.shape
    Sk = key.shape[1]
    d = E // heads
    assert d * heads == E
    scale = 1.0 / math.sqrt(d)

    wq, bq = params["fc_queries"]
    wk, bk = params["fc_keys"]
    wv, bv = params["fc_values"]
    wo, bo = params["fc_out"]

    def split_heads(x2d, s):
        x = x2d.reshape(N, s, heads, d)
        x = jnp.transpose(x, (0, 2, 1, 3))
        return x.reshape(N * heads, s, d)

    if (query is key) and (key is value):
        # Self-attention: fused QKV projection (activation read from HBM once).
        # 1/sqrt(d) scale folded into the Q weights & bias -> free scaling.
        w_qkv = jnp.concatenate([wq * scale, wk, wv], axis=1)        # (E, 3E)
        b_qkv = jnp.concatenate([bq * scale, bk, bv])                # (3E,)
        qkv = linear(query.reshape(N * Sq, E), w_qkv, b_qkv)         # (N*Sq, 3E)
        q2d, k2d, v2d = qkv[:, :E], qkv[:, E:2 * E], qkv[:, 2 * E:]
    else:
        q2d = linear(query.reshape(N * Sq, E), wq * scale, bq * scale)
        k2d = linear(key.reshape(N * Sk, E), wk, bk)
        v2d = linear(value.reshape(N * Sk, E), wv, bv)

    q = split_heads(q2d, Sq)
    k = split_heads(k2d, Sk)
    v = split_heads(v2d, Sk)

    attn = flash_attention(q, k, v)                                  # (N*H, Sq, d)

    attn = attn.reshape(N, heads, Sq, d)
    concat = jnp.transpose(attn, (0, 2, 1, 3)).reshape(N * Sq, E)

    out = linear(concat, wo, bo)
    return out.reshape(N, Sq, E)


@functools.partial(jax.jit, static_argnums=(2,))
def mha_self_attention(params, x, heads):
    # Same tracer passed for q/k/v -> fused QKV path is taken under jit.
    return multi_head_attention(params, x, x, x, heads)


@functools.partial(jax.jit, static_argnums=(4,))
def mha_forward(params, query, key, value, heads):
    return multi_head_attention(params, query, key, value, heads)


# ----------------------------------------------------------------------------
# Reference (pure JAX) for a sanity check
# ----------------------------------------------------------------------------
def reference_mha(params, query, key, value, heads):
    N, Sq, E = query.shape
    Sk = key.shape[1]
    d = E // heads

    def lin(name, x):
        w, b = params[name]
        return x @ w + b          # weights stored pre-transposed (E_in, E_out)

    def split(y, s):
        return jnp.transpose(y.reshape(N, s, heads, d), (0, 2, 1, 3))

    q = split(lin("fc_queries", query), Sq)
    k = split(lin("fc_keys", key), Sk)
    v = split(lin("fc_values", value), Sk)
    energy = jnp.einsum("nhqd,nhkd->nhqk", q, k) / math.sqrt(d)
    attn = jax.nn.softmax(energy, axis=-1)
    out = jnp.einsum("nhqk,nhkd->nhqd", attn, v)
    concat = jnp.transpose(out, (0, 2, 1, 3)).reshape(N, Sq, E)
    w_o, b_o = params["fc_out"]
    return concat @ w_o + b_o


if __name__ == "__main__":
    N, S, E, H = 2, 8, 32, 4

    root = jax.random.PRNGKey(0)
    kp, kx, kq, kk, kv = jax.random.split(root, 5)
    params = init_mha_params(kp, E)

    # Tolerance is slightly loose: approx reciprocal (EUP) + online-softmax
    # reassociation vs the plain-softmax reference.
    TOL = 5e-3

    # 1) Self-attention (fused QKV projection path).
    x = jax.random.normal(kx, (N, S, E), jnp.float32)
    out_self = jax.block_until_ready(mha_self_attention(params, x, H))
    ref_self = reference_mha(params, x, x, x, H)
    assert out_self.shape == (N, S, E)
    assert jnp.allclose(out_self, ref_self, atol=TOL, rtol=TOL), "self-attn mismatch"

    # 2) Cross-attention (separate projections, different KV length).
    Sk = 16
    query = jax.random.normal(kq, (N, S, E), jnp.float32)
    key = jax.random.normal(kk, (N, Sk, E), jnp.float32)
    value = jax.random.normal(kv, (N, Sk, E), jnp.float32)
    out_x = jax.block_until_ready(mha_forward(params, query, key, value, H))
    ref_x = reference_mha(params, query, key, value, H)
    assert out_x.shape == (N, S, E)
    assert jnp.allclose(out_x, ref_x, atol=TOL, rtol=TOL), "cross-attn mismatch"

    print("KERNEL_OK")
</pallas_src>

<mosaic_0001>
module attributes {stable_mosaic.version = 11 : i64} {
  func.func @_linear_kernel(%arg0: i32, %arg1: i32, %arg2: i32, %arg3: memref<16x32xf32, #tpu.memory_space<vmem>>, %arg4: memref<32x96xf32, #tpu.memory_space<vmem>>, %arg5: memref<1x96xf32, #tpu.memory_space<vmem>>, %arg6: memref<16x96xf32, #tpu.memory_space<vmem>>, %arg7: memref<16x96xf32, #tpu.memory_space<vmem>>) attributes {dimension_semantics = [#tpu.dimension_semantics<parallel>, #tpu.dimension_semantics<parallel>, #tpu.dimension_semantics<arbitrary>], iteration_bounds = array<i64: 1, 1, 1>, scalar_prefetch = 0 : i64, scratch_operands = 1 : i64, tpu.core_type = #tpu.core_type<tc>, window_params = [{transform_indices = @transform_0, window_bounds = array<i64: 16, 32>}, {transform_indices = @transform_1, window_bounds = array<i64: 32, 96>}, {transform_indices = @transform_2, window_bounds = array<i64: 1, 96>}, {transform_indices = @transform_3, window_bounds = array<i64: 16, 96>}]} {
    %c0_i32 = arith.constant 0 : i32
    %0 = arith.cmpi eq, %arg2, %c0_i32 : i32
    %1 = arith.extui %0 : i1 to i32
    %c0_i32_0 = arith.constant 0 : i32
    %2 = arith.cmpi ne, %1, %c0_i32_0 : i32
    scf.if %2 {
      %cst_10 = arith.constant 0.000000e+00 : f32
      %12 = vector.broadcast %cst_10 : f32 to vector<16x96xf32>
      %c0_11 = arith.constant 0 : index
      %c0_12 = arith.constant 0 : index
      %13 = vector.load %arg7[%c0_11, %c0_12] : memref<16x96xf32, #tpu.memory_space<vmem>>, vector<16x96xf32>
      tpu.vector_store %arg7[%c0_11, %c0_12], %12 {strides = array<i32>} : memref<16x96xf32, #tpu.memory_space<vmem>>, vector<16x96xf32>,
    } else {
    }
    %c0 = arith.constant 0 : index
    %c0_1 = arith.constant 0 : index
    %3 = vector.load %arg7[%c0, %c0_1] : memref<16x96xf32, #tpu.memory_space<vmem>>, vector<16x96xf32>
    %c0_2 = arith.constant 0 : index
    %c0_3 = arith.constant 0 : index
    %4 = vector.load %arg3[%c0_2, %c0_3] : memref<16x32xf32, #tpu.memory_space<vmem>>, vector<16x32xf32>
    %c0_4 = arith.constant 0 : index
    %c0_5 = arith.constant 0 : index
    %5 = vector.load %arg4[%c0_4, %c0_5] : memref<32x96xf32, #tpu.memory_space<vmem>>, vector<32x96xf32>
    %cst = arith.constant dense<0.000000e+00> : vector<16x96xf32>
    %6 = tpu.matmul %4, %5, %cst {dimension_numbers = #tpu.dot_dimension_numbers<[1], [0], [0], [1], [0, 0, 1, 1], [], []>} : vector<16x32xf32>, vector<32x96xf32>, vector<16x96xf32> -> vector<16x96xf32>
    %7 = arith.addf %3, %6 : vector<16x96xf32>
    %c0_6 = arith.constant 0 : index
    %c0_7 = arith.constant 0 : index
    %8 = vector.load %arg7[%c0_6, %c0_7] : memref<16x96xf32, #tpu.memory_space<vmem>>, vector<16x96xf32>
    tpu.vector_store %arg7[%c0_6, %c0_7], %7 {strides = array<i32>} : memref<16x96xf32, #tpu.memory_space<vmem>>, vector<16x96xf32>,
    %c0_i32_8 = arith.constant 0 : i32
    %9 = arith.cmpi eq, %arg2, %c0_i32_8 : i32
    %10 = arith.extui %9 : i1 to i32
    %c0_i32_9 = arith.constant 0 : i32
    %11 = arith.cmpi ne, %10, %c0_i32_9 : i32
    scf.if %11 {
      %c0_10 = arith.constant 0 : index
      %c0_11 = arith.constant 0 : index
      %12 = vector.load %arg7[%c0_10, %c0_11] : memref<16x96xf32, #tpu.memory_space<vmem>>, vector<16x96xf32>
      %c0_12 = arith.constant 0 : index
      %c0_13 = arith.constant 0 : index
      %13 = vector.load %arg5[%c0_12, %c0_13] : memref<1x96xf32, #tpu.memory_space<vmem>>, vector<1x96xf32>
      %14 = vector.broadcast %13 : vector<1x96xf32> to vector<16x96xf32>
      %15 = arith.addf %12, %14 : vector<16x96xf32>
      %c0_14 = arith.constant 0 : index
      %c0_15 = arith.constant 0 : index
      %16 = vector.load %arg6[%c0_14, %c0_15] : memref<16x96xf32, #tpu.memory_space<vmem>>, vector<16x96xf32>
      tpu.vector_store %arg6[%c0_14, %c0_15], %15 {strides = array<i32>} : memref<16x96xf32, #tpu.memory_space<vmem>>, vector<16x96xf32>,
    } else {
    }
    return
  }
  func.func @transform_0(%arg0: i32, %arg1: i32, %arg2: i32) -> (i32, i32) {
    %c0_i32 = arith.constant 0 : i32
    return %arg0, %arg2 : i32, i32
  }
  func.func @transform_1(%arg0: i32, %arg1: i32, %arg2: i32) -> (i32, i32) {
    %c0_i32 = arith.constant 0 : i32
    return %arg2, %arg1 : i32, i32
  }
  func.func @transform_2(%arg0: i32, %arg1: i32, %arg2: i32) -> (i32, i32) {
    %c0_i32 = arith.constant 0 : i32
    %c0_i32_0 = arith.constant 0 : i32
    return %c0_i32, %arg1 : i32, i32
  }
  func.func @transform_3(%arg0: i32, %arg1: i32, %arg2: i32) -> (i32, i32) {
    %c0_i32 = arith.constant 0 : i32
    return %arg0, %arg1 : i32, i32
  }
}

module attributes {stable_mosaic.version = 11 : i64} {
  func.func @_flash_kernel(%arg0: i32, %arg1: i32, %arg2: i32, %arg3: memref<1x8x8xf32, #tpu.memory_space<vmem>>, %arg4: memref<1x8x8xf32, #tpu.memory_space<vmem>>, %arg5: memref<1x8x8xf32, #tpu.memory_space<vmem>>, %arg6: memref<1x8x8xf32, #tpu.memory_space<vmem>>, %arg7: memref<8x1xf32, #tpu.memory_space<vmem>>, %arg8: memref<8x1xf32, #tpu.memory_space<vmem>>, %arg9: memref<8x8xf32, #tpu.memory_space<vmem>>) attributes {dimension_semantics = [#tpu.dimension_semantics<parallel>, #tpu.dimension_semantics<parallel>, #tpu.dimension_semantics<arbitrary>], iteration_bounds = array<i64: 8, 1, 1>, scalar_prefetch = 0 : i64, scratch_operands = 3 : i64, tpu.core_type = #tpu.core_type<tc>, window_params = [{transform_indices = @transform_0, window_bounds = array<i64: 1, 8, 8>}, {transform_indices = @transform_1, window_bounds = array<i64: 1, 8, 8>}, {transform_indices = @transform_2, window_bounds = array<i64: 1, 8, 8>}, {transform_indices = @transform_3, window_bounds = array<i64: 1, 8, 8>}]} {
    %c0_i32 = arith.constant 0 : i32
    %0 = arith.cmpi eq, %arg2, %c0_i32 : i32
    %1 = arith.extui %0 : i1 to i32
    %c0_i32_0 = arith.constant 0 : i32
    %2 = arith.cmpi ne, %1, %c0_i32_0 : i32
    scf.if %2 {
      %cst_26 = arith.constant 0xFF800000 : f32
      %35 = vector.broadcast %cst_26 : f32 to vector<8x1xf32>
      %c0_27 = arith.constant 0 : index
      %c0_28 = arith.constant 0 : index
      %36 = vector.load %arg7[%c0_27, %c0_28] : memref<8x1xf32, #tpu.memory_space<vmem>>, vector<8x1xf32>
      tpu.vector_store %arg7[%c0_27, %c0_28], %35 {strides = array<i32>} : memref<8x1xf32, #tpu.memory_space<vmem>>, vector<8x1xf32>,
      %cst_29 = arith.constant 0.000000e+00 : f32
      %37 = vector.broadcast %cst_29 : f32 to vector<8x1xf32>
      %c0_30 = arith.constant 0 : index
      %c0_31 = arith.constant 0 : index
      %38 = vector.load %arg8[%c0_30, %c0_31] : memref<8x1xf32, #tpu.memory_space<vmem>>, vector<8x1xf32>
      tpu.vector_store %arg8[%c0_30, %c0_31], %37 {strides = array<i32>} : memref<8x1xf32, #tpu.memory_space<vmem>>, vector<8x1xf32>,
      %cst_32 = arith.constant 0.000000e+00 : f32
      %39 = vector.broadcast %cst_32 : f32 to vector<8x8xf32>
      %c0_33 = arith.constant 0 : index
      %c0_34 = arith.constant 0 : index
      %40 = vector.load %arg9[%c0_33, %c0_34] : memref<8x8xf32, #tpu.memory_space<vmem>>, vector<8x8xf32>
      tpu.vector_store %arg9[%c0_33, %c0_34], %39 {strides = array<i32>} : memref<8x8xf32, #tpu.memory_space<vmem>>, vector<8x8xf32>,
    } else {
    }
    %c0 = arith.constant 0 : index
    %c0_1 = arith.constant 0 : index
    %c0_2 = arith.constant 0 : index
    %3 = vector.load %arg3[%c0, %c0_1, %c0_2] : memref<1x8x8xf32, #tpu.memory_space<vmem>>, vector<1x8x8xf32>
    %4 = vector.shape_cast %3 : vector<1x8x8xf32> to vector<8x8xf32>
    %c0_3 = arith.constant 0 : index
    %c0_4 = arith.constant 0 : index
    %c0_5 = arith.constant 0 : index
    %5 = vector.load %arg4[%c0_3, %c0_4, %c0_5] : memref<1x8x8xf32, #tpu.memory_space<vmem>>, vector<1x8x8xf32>
    %6 = vector.shape_cast %5 : vector<1x8x8xf32> to vector<8x8xf32>
    %c0_6 = arith.constant 0 : index
    %c0_7 = arith.constant 0 : index
    %c0_8 = arith.constant 0 : index
    %7 = vector.load %arg5[%c0_6, %c0_7, %c0_8] : memref<1x8x8xf32, #tpu.memory_space<vmem>>, vector<1x8x8xf32>
    %8 = vector.shape_cast %7 : vector<1x8x8xf32> to vector<8x8xf32>
    %cst = arith.constant dense<0.000000e+00> : vector<8x8xf32>
    %9 = tpu.matmul %4, %6, %cst {dimension_numbers = #tpu.dot_dimension_numbers<[1], [1], [0], [0], [0, 0, 1, 0], [], []>} : vector<8x8xf32>, vector<8x8xf32>, vector<8x8xf32> -> vector<8x8xf32>
    %c0_9 = arith.constant 0 : index
    %c0_10 = arith.constant 0 : index
    %10 = vector.load %arg7[%c0_9, %c0_10] : memref<8x1xf32, #tpu.memory_space<vmem>>, vector<8x1xf32>
    %cst_11 = arith.constant dense<0xFF800000> : vector<8xf32>
    %11 = vector.multi_reduction <maximumf>, %9, %cst_11 [1] : vector<8x8xf32> to vector<8xf32>
    %12 = vector.shape_cast %11 : vector<8xf32> to vector<8x1xf32>
    %13 = arith.maximumf %10, %12 : vector<8x1xf32>
    %14 = arith.subf %10, %13 : vector<8x1xf32>
    %15 = math.exp %14 : vector<8x1xf32>
    %16 = vector.broadcast %13 : vector<8x1xf32> to vector<8x8xf32>
    %17 = arith.subf %9, %16 : vector<8x8xf32>
    %18 = math.exp %17 : vector<8x8xf32>
    %c0_12 = arith.constant 0 : index
    %c0_13 = arith.constant 0 : index
    %19 = vector.load %arg8[%c0_12, %c0_13] : memref<8x1xf32, #tpu.memory_space<vmem>>, vector<8x1xf32>
    %20 = arith.mulf %15, %19 : vector<8x1xf32>
    %cst_14 = arith.constant dense<0.000000e+00> : vector<8xf32>
    %21 = vector.multi_reduction <add>, %18, %cst_14 [1] : vector<8x8xf32> to vector<8xf32>
    %22 = vector.shape_cast %21 : vector<8xf32> to vector<8x1xf32>
    %23 = arith.addf %20, %22 : vector<8x1xf32>
    %c0_15 = arith.constant 0 : index
    %c0_16 = arith.constant 0 : index
    %24 = vector.load %arg8[%c0_15, %c0_16] : memref<8x1xf32, #tpu.memory_space<vmem>>, vector<8x1xf32>
    tpu.vector_store %arg8[%c0_15, %c0_16], %23 {strides = array<i32>} : memref<8x1xf32, #tpu.memory_space<vmem>>, vector<8x1xf32>,
    %c0_17 = arith.constant 0 : index
    %c0_18 = arith.constant 0 : index
    %25 = vector.load %arg9[%c0_17, %c0_18] : memref<8x8xf32, #tpu.memory_space<vmem>>, vector<8x8xf32>
    %26 = vector.broadcast %15 : vector<8x1xf32> to vector<8x8xf32>
    %27 = arith.mulf %26, %25 : vector<8x8xf32>
    %cst_19 = arith.constant dense<0.000000e+00> : vector<8x8xf32>
    %28 = tpu.matmul %18, %8, %cst_19 {dimension_numbers = #tpu.dot_dimension_numbers<[1], [0], [0], [1], [0, 0, 1, 1], [], []>} : vector<8x8xf32>, vector<8x8xf32>, vector<8x8xf32> -> vector<8x8xf32>
    %29 = arith.addf %27, %28 : vector<8x8xf32>
    %c0_20 = arith.constant 0 : index
    %c0_21 = arith.constant 0 : index
    %30 = vector.load %arg9[%c0_20, %c0_21] : memref<8x8xf32, #tpu.memory_space<vmem>>, vector<8x8xf32>
    tpu.vector_store %arg9[%c0_20, %c0_21], %29 {strides = array<i32>} : memref<8x8xf32, #tpu.memory_space<vmem>>, vector<8x8xf32>,
    %c0_22 = arith.constant 0 : index
    %c0_23 = arith.constant 0 : index
    %31 = vector.load %arg7[%c0_22, %c0_23] : memref<8x1xf32, #tpu.memory_space<vmem>>, vector<8x1xf32>
    tpu.vector_store %arg7[%c0_22, %c0_23], %13 {strides = array<i32>} : memref<8x1xf32, #tpu.memory_space<vmem>>, vector<8x1xf32>,
    %c0_i32_24 = arith.constant 0 : i32
    %32 = arith.cmpi eq, %arg2, %c0_i32_24 : i32
    %33 = arith.extui %32 : i1 to i32
    %c0_i32_25 = arith.constant 0 : i32
    %34 = arith.cmpi ne, %33, %c0_i32_25 : i32
    scf.if %34 {
      %c0_26 = arith.constant 0 : index
      %c0_27 = arith.constant 0 : index
      %35 = vector.load %arg8[%c0_26, %c0_27] : memref<8x1xf32, #tpu.memory_space<vmem>>, vector<8x1xf32>
      %36 = tpu.reciprocal %35 {approx = true} : vector<8x1xf32> -> vector<8x1xf32>
      %c0_28 = arith.constant 0 : index
      %c0_29 = arith.constant 0 : index
      %37 = vector.load %arg9[%c0_28, %c0_29] : memref<8x8xf32, #tpu.memory_space<vmem>>, vector<8x8xf32>
      %38 = vector.broadcast %36 : vector<8x1xf32> to vector<8x8xf32>
      %39 = arith.mulf %37, %38 : vector<8x8xf32>
      %c0_30 = arith.constant 0 : index
      %c0_31 = arith.constant 0 : index
      %c0_32 = arith.constant 0 : index
      %40 = vector.load %arg6[%c0_30, %c0_31, %c0_32] : memref<1x8x8xf32, #tpu.memory_space<vmem>>, vector<1x8x8xf32>
      %41 = vector.shape_cast %40 : vector<1x8x8xf32> to vector<8x8xf32>
      %42 = vector.shape_cast %39 : vector<8x8xf32> to vector<1x8x8xf32>
      tpu.vector_store %arg6[%c0_30, %c0_31, %c0_32], %42 {strides = array<i32>} : memref<1x8x8xf32, #tpu.memory_space<vmem>>, vector<1x8x8xf32>,
    } else {
    }
    return
  }
  func.func @transform_0(%arg0: i32, %arg1: i32, %arg2: i32) -> (i32, i32, i32) {
    %c0_i32 = arith.constant 0 : i32
    %c0_i32_0 = arith.constant 0 : i32
    return %arg0, %arg1, %c0_i32 : i32, i32, i32
  }
  func.func @transform_1(%arg0: i32, %arg1: i32, %arg2: i32) -> (i32, i32, i32) {
    %c0_i32 = arith.constant 0 : i32
    %c0_i32_0 = arith.constant 0 : i32
    return %arg0, %arg2, %c0_i32 : i32, i32, i32
  }
  func.func @transform_2(%arg0: i32, %arg1: i32, %arg2: i32) -> (i32, i32, i32) {
    %c0_i32 = arith.constant 0 : i32
    %c0_i32_0 = arith.constant 0 : i32
    return %arg0, %arg2, %c0_i32 : i32, i32, i32
  }
  func.func @transform_3(%arg0: i32, %arg1: i32, %arg2: i32) -> (i32, i32, i32) {
    %c0_i32 = arith.constant 0 : i32
    %c0_i32_0 = arith.constant 0 : i32
    return %arg0, %arg1, %c0_i32 : i32, i32, i32
  }
}

module attributes {stable_mosaic.version = 11 : i64} {
  func.func @_linear_kernel(%arg0: i32, %arg1: i32, %arg2: i32, %arg3: memref<16x32xf32, #tpu.memory_space<vmem>>, %arg4: memref<32x32xf32, #tpu.memory_space<vmem>>, %arg5: memref<1x32xf32, #tpu.memory_space<vmem>>, %arg6: memref<16x32xf32, #tpu.memory_space<vmem>>, %arg7: memref<16x32xf32, #tpu.memory_space<vmem>>) attributes {dimension_semantics = [#tpu.dimension_semantics<parallel>, #tpu.dimension_semantics<parallel>, #tpu.dimension_semantics<arbitrary>], iteration_bounds = array<i64: 1, 1, 1>, scalar_prefetch = 0 : i64, scratch_operands = 1 : i64, tpu.core_type = #tpu.core_type<tc>, window_params = [{transform_indices = @transform_0, window_bounds = array<i64: 16, 32>}, {transform_indices = @transform_1, window_bounds = array<i64: 32, 32>}, {transform_indices = @transform_2, window_bounds = array<i64: 1, 32>}, {transform_indices = @transform_3, window_bounds = array<i64: 16, 32>}]} {
    %c0_i32 = arith.constant 0 : i32
    %0 = arith.cmpi eq, %arg2, %c0_i32 : i32
    %1 = arith.extui %0 : i1 to i32
    %c0_i32_0 = arith.constant 0 : i32
    %2 = arith.cmpi ne, %1, %c0_i32_0 : i32
    scf.if %2 {
      %cst_10 = arith.constant 0.000000e+00 : f32
      %12 = vector.broadcast %cst_10 : f32 to vector<16x32xf32>
      %c0_11 = arith.constant 0 : index
      %c0_12 = arith.constant 0 : index
      %13 = vector.load %arg7[%c0_11, %c0_12] : memref<16x32xf32, #tpu.memory_space<vmem>>, vector<16x32xf32>
      tpu.vector_store %arg7[%c0_11, %c0_12], %12 {strides = array<i32>} : memref<16x32xf32, #tpu.memory_space<vmem>>, vector<16x32xf32>,
    } else {
    }
    %c0 = arith.constant 0 : index
    %c0_1 = arith.constant 0 : index
    %3 = vector.load %arg7[%c0, %c0_1] : memref<16x32xf32, #tpu.memory_space<vmem>>, vector<16x32xf32>
    %c0_2 = arith.constant 0 : index
    %c0_3 = arith.constant 0 : index
    %4 = vector.load %arg3[%c0_2, %c0_3] : memref<16x32xf32, #tpu.memory_space<vmem>>, vector<16x32xf32>
    %c0_4 = arith.constant 0 : index
    %c0_5 = arith.constant 0 : index
    %5 = vector.load %arg4[%c0_4, %c0_5] : memref<32x32xf32, #tpu.memory_space<vmem>>, vector<32x32xf32>
    %cst = arith.constant dense<0.000000e+00> : vector<16x32xf32>
    %6 = tpu.matmul %4, %5, %cst {dimension_numbers = #tpu.dot_dimension_numbers<[1], [0], [0], [1], [0, 0, 1, 1], [], []>} : vector<16x32xf32>, vector<32x32xf32>, vector<16x32xf32> -> vector<16x32xf32>
    %7 = arith.addf %3, %6 : vector<16x32xf32>
    %c0_6 = arith.constant 0 : index
    %c0_7 = arith.constant 0 : index
    %8 = vector.load %arg7[%c0_6, %c0_7] : memref<16x32xf32, #tpu.memory_space<vmem>>, vector<16x32xf32>
    tpu.vector_store %arg7[%c0_6, %c0_7], %7 {strides = array<i32>} : memref<16x32xf32, #tpu.memory_space<vmem>>, vector<16x32xf32>,
    %c0_i32_8 = arith.constant 0 : i32
    %9 = arith.cmpi eq, %arg2, %c0_i32_8 : i32
    %10 = arith.extui %9 : i1 to i32
    %c0_i32_9 = arith.constant 0 : i32
    %11 = arith.cmpi ne, %10, %c0_i32_9 : i32
    scf.if %11 {
      %c0_10 = arith.constant 0 : index
      %c0_11 = arith.constant 0 : index
      %12 = vector.load %arg7[%c0_10, %c0_11] : memref<16x32xf32, #tpu.memory_space<vmem>>, vector<16x32xf32>
      %c0_12 = arith.constant 0 : index
      %c0_13 = arith.constant 0 : index
      %13 = vector.load %arg5[%c0_12, %c0_13] : memref<1x32xf32, #tpu.memory_space<vmem>>, vector<1x32xf32>
      %14 = vector.broadcast %13 : vector<1x32xf32> to vector<16x32xf32>
      %15 = arith.addf %12, %14 : vector<16x32xf32>
      %c0_14 = arith.constant 0 : index
      %c0_15 = arith.constant 0 : index
      %16 = vector.load %arg6[%c0_14, %c0_15] : memref<16x32xf32, #tpu.memory_space<vmem>>, vector<16x32xf32>
      tpu.vector_store %arg6[%c0_14, %c0_15], %15 {strides = array<i32>} : memref<16x32xf32, #tpu.memory_space<vmem>>, vector<16x32xf32>,
    } else {
    }
    return
  }
  func.func @transform_0(%arg0: i32, %arg1: i32, %arg2: i32) -> (i32, i32) {
    %c0_i32 = arith.constant 0 : i32
    return %arg0, %arg2 : i32, i32
  }
  func.func @transform_1(%arg0: i32, %arg1: i32, %arg2: i32) -> (i32, i32) {
    %c0_i32 = arith.constant 0 : i32
    return %arg2, %arg1 : i32, i32
  }
  func.func @transform_2(%arg0: i32, %arg1: i32, %arg2: i32) -> (i32, i32) {
    %c0_i32 = arith.constant 0 : i32
    %c0_i32_0 = arith.constant 0 : i32
    return %c0_i32, %arg1 : i32, i32
  }
  func.func @transform_3(%arg0: i32, %arg1: i32, %arg2: i32) -> (i32, i32) {
    %c0_i32 = arith.constant 0 : i32
    return %arg0, %arg1 : i32, i32
  }
}

</mosaic_0001>

<bundles_post_ra>
// kernel: mha_self_attention.3
= control target key start
LH: loop header
LB: loop body
LE: loop exit
PB: predicated region body
PF: predicated region fallthrough
CT: control target
= control target key end

     0   :  { %vm29_vm0 = vcmask 261120   ;;  %vm18_vm1 = vcmask 785408   ;;  %v165_v3 = vmov 0.0   ;;  %s221_s1 = inlined_call_operand.vmem [shape: f32[32,96], index: 1, kind: input, shape index: {}]   ;;  %s222_s0 = inlined_call_operand.vmem [shape: f32[16,32], index: 0, kind: input, shape index: {}]   ;;  %s223_s2 = inlined_call_operand.vmem [shape: f32[1,96], index: 2, kind: input, shape index: {}]   ;;  %s224_s3 = inlined_call_operand.vmem [shape: f32[16,96], index: 3, kind: output, shape index: {}]  }
   0x1   :  { %v25_v0 = vld [vmem:[%s221_s1] sm:$0xff]  ;;  %v26_v1 = vld [vmem:[%s221_s1 + $0x8] sm:$0xff]  ;;  %v27_v2 = vld [vmem:[%s221_s1 + $0x10] sm:$0xff]  ;;  %20 = vst.msk [vmem:[#allocation2 + $0x8] sm:$0xff] %vm18_vm1, %v165_v3 }
   0x2   :  { %19 = vst.msk [vmem:[#allocation2] sm:$0xff] %vm18_vm1, %v165_v3  ;;  %v156_v4 = vpack.c.bf16 %v26_v1, %v25_v0  ;;  %v28_v5 = vld [vmem:[%s221_s1 + $0x18] sm:$0xff]  ;;  %v23_v6 = vld [vmem:[%s222_s0] sm:$0xff]  ;;  %v24_v8 = vld [vmem:[%s222_s0 + $0x8] sm:$0xff] }
   0x3   :  { %v160_v7 = vpack.c.bf16 %v28_v5, %v27_v2  ;;  %153 = vmatprep.mubr.msk.f32.mxu0 %vm29_vm0, %v23_v6  ;;  %v138_v15 = vld [vmem:[%s223_s2] ss:$0 sm:$0xff] }
   0x4   :  { %157 = vmatprep.subr.bf16.mxu0 %v156_v4 }
   0x5   :  { %159 = vmatpush3.bf16.msra.mxu0 %v156_v4 }
   0x6   :  { %161 = vmatprep.subr.bf16.mxu0 %v160_v7 }
   0x8   :  { %v22_v9 = vld [vmem:[#allocation2 + $0x8] sm:$0xff] }
   0x9   :  { %163 = vmatpush3.bf16.msra.mxu0 %v160_v7  ;;  %v21_v10 = vld [vmem:[#allocation2] sm:$0xff] }
   0xc   :  { %154 = vmatmul.mubr.msk.f32.vlgmr.msra.gmra.mrb[0].mxu0 %vm29_vm0, %v24_v8 }
  0xdf   :  { %v155_v11 = vpop.f32.mrb[0].mxu0 }
  0xe0   :  { %v112_v12 = vadd.f32 %v155_v11, %v22_v9  ;;  %v102_v13 = vpop.f32.mrb[1].mxu0 }
  0xe1   :  { %v111_v14 = vadd.f32 %v102_v13, %v21_v10 }
  0xe2   :  { %115 = vst.msk [vmem:[#allocation2 + $0x8] sm:$0xff] %vm18_vm1, %v112_v12 }
  0xe3   :  { %114 = vst.msk [vmem:[#allocation2] sm:$0xff] %vm18_vm1, %v111_v14 }
  0xe9   :  { %v120_v16 = vld [vmem:[#allocation2 + $0x8] sm:$0xff] }
  0xea   :  { %v129_v17 = vadd.f32 %v138_v15, %v120_v16  ;;  %v119_v18 = vld [vmem:[#allocation2] sm:$0xff] }
  0xeb   :  { %v128_v19 = vadd.f32 %v138_v15, %v119_v18 }
  0xec   :  { %131 = vst.msk [vmem:[%s224_s3 + $0x8] sm:$0xff] %vm18_vm1, %v129_v17 }
  0xed   :  { %130 = vst.msk [vmem:[%s224_s3] sm:$0xff] %vm18_vm1, %v128_v19 }

// kernel: mha_self_attention.4
= control target key start
LH: loop header
LB: loop body
LE: loop exit
PB: predicated region body
PF: predicated region fallthrough
CT: control target
= control target key end

     0   :  { %s688_s12 = smov 0   ;;  %s690_s13 = smov 0   ;;  %s745_s0 = inlined_call_operand.vmem [shape: f32[8,8,8], index: 0, kind: input, shape index: {}]   ;;  %s746_s1 = inlined_call_operand.vmem [shape: f32[8,8,8], index: 1, kind: input, shape index: {}]   ;;  %s747_s2 = inlined_call_operand.vmem [shape: f32[8,8,8], index: 2, kind: input, shape index: {}]   ;;  %s748_s3 = inlined_call_operand.vmem [shape: f32[8,8,8], index: 3, kind: output, shape index: {}]  }
   0x1   :  { %s692_s14 = smov 0  }
   0x2 LB: > { %s32_s15 = sadd.s32 1, %s658_s13  ;;  %p580_p0 = scmp.ge.s32.totalorder %s662_s14, 1  ;;  %s662_s14 = sphi %s692_s14, %s13_s14   ;;  %s658_s13 = sphi %s690_s13, %s750_s13   ;;  %s654_s12 = sphi %s688_s12, %s749_s12  }
   0x3   : > { %p34_p1 = scmp.ge.s32.totalorder %s32_s15, 8  ;;  %p190_p2 = scmp.lt.s32.totalorder %s662_s14, 9 }
   0x5   : > { %s752_s15 = smov (%p34_p1, %s32_s15), 0  ;;  %p191_p3 = pnand %p580_p0, %p190_p2 }
   0x6   : > { %p232_p4 = scmp.lt.s32.totalorder (!%p191_p3), %s654_s12, 7  ;;  %vm267_vm0 = vcmask (!%p191_p3), 64512   ;;  %v664_v0 = vmov (!%p191_p3), 0.0   ;;  %vm665_vm1 = vmmov (!%p191_p3), 0   ;;  %vm264_vm2 = vcmask (!%p191_p3), 7168  }
   0x7   : > { %194 = sbr.rel (%p191_p3) target bundleno = 816 (0x330), region = 32  ;;  %594 = vmatprep.subr.mxu0 (!%p191_p3), %v664_v0  ;;  %268 = vst.msk [vmem:[#allocation4] sm:$0xff] (!%p191_p3), %vm267_vm0, %v664_v0  ;;  %596 = vmatprep.mubr.msk.f32.mxu0 (!%p191_p3), %vm665_vm1, %v664_v0  ;;  %v666_v3 = vmov (!%p191_p3), -inf   ;;  %v667_v7 = vmov (!%p191_p3), 0  }
   0x8   : > { %599 = vmatprep.subr.mxu1 (!%p191_p3), %v664_v0  ;;  %601 = vmatprep.mubr.msk.f32.mxu1 (!%p191_p3), %vm665_vm1, %v664_v0  ;;  %265 = vst.msk [vmem:[#allocation2] sm:$0xff] (!%p191_p3), %vm264_vm2, %v666_v3  ;;  %266 = vst.msk [vmem:[#allocation3] sm:$0xff] (!%p191_p3), %vm264_vm2, %v664_v0 }
   0x9   : > { %632 = vset.pattern.permute.xlu0 (!%p191_p3), %v667_v7  ;;  %633 = vset.pattern.permute.xlu1 (!%p191_p3), %v667_v7 }
   0xe   : > { %s754_s12 = smov (!%p232_p4, %s654_s12), 7  ;;  %v373_v26 = vld [vmem:[#allocation4] sm:$0xff] }
   0xf   : > { %s707_s16 = sshll.u32 %s754_s12, 3  ;;  %v349_v8 = vld [vmem:[#allocation2] sm:$0xff]  ;;  %v365_v20 = vld [vmem:[#allocation3] sm:$0xff] }
  0x10   : > { %s245_s19 = scalar_lea.vmem %s746_s1, %s707_s16  ;;  %s238_s22 = scalar_lea.vmem %s745_s0, %s707_s16 }
  0x11   : > { %v270_v1 = vld [vmem:[%s245_s19] sm:$0xff]  ;;  %s252_s25 = scalar_lea.vmem %s747_s2, %s707_s16  ;;  %s259_s28 = scalar_lea.vmem %s748_s3, %s707_s16 }
  0x12   : > { %595 = vmatpush3.xpose.msk.msra.mxu0 %vm267_vm0, %v270_v1  ;;  %v269_v2 = vld [vmem:[%s238_s22] sm:$0xff] }
  0x13   : > { %v271_v12 = vld [vmem:[%s252_s25] sm:$0xff] }
  0x14   : > { %600 = vmatpush3.msra.mxu1 %v271_v12 }
  0x15   : > { %597 = vmatmul.mubr.msk.f32.vlgmr.msra.gmra.mrb[0].mxu0 %vm267_vm0, %v269_v2 }
  0xe8   : > { %v345_v4 = vpop.f32.mrb[0].mxu0 }
  0xe9   : > { %v598_v5 = vpop.f32.mrb[1].mxu0  ;;  %v350_v6 = vsel %vm267_vm0, %v345_v4, -inf }
  0xea   : > { %351 = vmax.xlane.f32.xlu0 %v350_v6 }
 0x177   : > { %v352_v9 = vpop.xlane.xlu0 %351 }
 0x178   : > { %v353_v10 = vmax.f32 %v349_v8, %v352_v9 }
 0x17a   : > { %v354_v11 = vsub.f32 %v349_v8, %v353_v10  ;;  %455 = vst.msk [vmem:[#allocation2] sm:$0xff] %vm264_vm2, %v353_v10  ;;  %359 = vperm.xlu0 %632, %v353_v10  }
 0x17c   : > { %v355_v18 = vmul.f32 1.442695, %v354_v11 }
 0x1f9   : > { %v360_v13 = vpop.permute.xlu0 %359 }
 0x1fa   : > { %v362_v14 = vsub.f32 %v345_v4, %v360_v13 }
 0x1fc   : > { %v363_v15 = vmul.f32 1.442695, %v362_v14 }
 0x1fe   : > { %634 = vpow2.f32 %v363_v15 }
 0x1ff   : > { %636 = vpow2.f32 %v355_v18 }
 0x208   : > { %v635_v16 = vpop.eup %634 }
 0x209   : > { %602 = vmatmul.mubr.msk.f32.vlgmr.msra.gmra.mrb[0].mxu1 %vm267_vm0, %v635_v16  ;;  %v367_v17 = vsel %vm267_vm0, %v635_v16, 0.0  ;;  %v637_v19 = vpop.eup %636 }
 0x20a   : > { %368 = vadd.xlane.f32.xlu1 %v367_v17  ;;  %v366_v21 = vmul.f32 %v637_v19, %v365_v20 }
 0x21b   : > { %376 = vperm.xlu1 %633, %v637_v19  }
 0x297   : > { %v369_v22 = vpop.xlane.xlu1 %368 }
 0x298   : > { %v370_v23 = vadd.f32 %v369_v22, %v366_v21 }
 0x29a   : > { %372 = vst.msk [vmem:[#allocation3] sm:$0xff] %vm264_vm2, %v370_v23 }
 0x29b   : > { %v377_v27 = vpop.permute.xlu1 %376 }
 0x29c   : > { %v379_v28 = vmul.f32 %v377_v27, %v373_v26 }
 0x2a1   : > { %v459_v24 = vld [vmem:[#allocation3] sm:$0xff] }
 0x2a2   : > { %638 = vrcp.f32 %v459_v24 }
 0x2ac   : > { %v639_v25 = vpop.eup %638 }
 0x2ad   : > { %464 = vperm.xlu1 %633, %v639_v25  }
 0x2dc   : > { %v449_v29 = vpop.f32.mrb[0].mxu1 }
 0x2dd   : > { %v453_v30 = vadd.f32 %v449_v29, %v379_v28  ;;  %v603_v31 = vpop.f32.mrb[1].mxu1 }
 0x2df   : > { %454 = vst.msk [vmem:[#allocation4] sm:$0xff] %vm267_vm0, %v453_v30 }
 0x2e6   : > { %v461_v32 = vld [vmem:[#allocation4] sm:$0xff] }
 0x32c   : > { %v465_v33 = vpop.permute.xlu1 %464 }
 0x32d   : > { %v467_v34 = vmul.f32 %v465_v33, %v461_v32 }
 0x32f   : > { %468 = vst.msk [vmem:[%s259_s28] sm:$0xff] %vm267_vm0, %v467_v34 }
 0x330 PF: > { %s13_s14 = sadd.s32 1, %s662_s14   ;;  %s749_s12 = smov %s658_s13 }
 0x331   : > { %p10_p5 = scmp.ge.s32.totalorder %s13_s14, 10   ;;  %s750_s13 = smov %s752_s15 }
 0x333   :  { %12 = sbr.rel (!%p10_p5) target bundleno = 2 (0x2), region = 76 }

// kernel: mha_self_attention.5
= control target key start
LH: loop header
LB: loop body
LE: loop exit
PB: predicated region body
PF: predicated region fallthrough
CT: control target
= control target key end

     0   :  { %vm19_vm0 = vcmask 261120   ;;  %v204_v6 = vmov 0.0   ;;  %s269_s0 = inlined_call_operand.vmem [shape: f32[16,32], index: 0, kind: input, shape index: {}]   ;;  %s270_s1 = inlined_call_operand.vmem [shape: f32[32,32], index: 1, kind: input, shape index: {}]   ;;  %s271_s2 = inlined_call_operand.vmem [shape: f32[1,32], index: 2, kind: input, shape index: {}]   ;;  %s272_s3 = inlined_call_operand.hbm [shape: f32[16,32], index: 3, kind: output, shape index: {}]  }
   0x1   :  { %v26_v0 = vld [vmem:[%s270_s1] sm:$0xff]  ;;  %v27_v1 = vld [vmem:[%s270_s1 + $0x8] sm:$0xff]  ;;  %v28_v2 = vld [vmem:[%s270_s1 + $0x10] sm:$0xff]  ;;  %21 = vst.msk [vmem:[#allocation2 + $0x8] sm:$0xff] %vm19_vm0, %v204_v6 }
   0x2   :  { %v168_v3 = vpack.c.bf16 %v27_v1, %v26_v0  ;;  %v29_v4 = vld [vmem:[%s270_s1 + $0x18] sm:$0xff]  ;;  %v24_v5 = vld [vmem:[%s269_s0] sm:$0xff]  ;;  %20 = vst.msk [vmem:[#allocation2] sm:$0xff] %vm19_vm0, %v204_v6 }
   0x3   :  { %v172_v7 = vpack.c.bf16 %v29_v4, %v28_v2  ;;  %165 = vmatprep.mubr.msk.f32.mxu0 %vm19_vm0, %v24_v5 }
   0x4   :  { %8 = vsyncpa [#allocation4], 0  ;;  %169 = vmatprep.subr.bf16.mxu0 %v168_v3  ;;  %v25_v8 = vld [vmem:[%s269_s0 + $0x8] sm:$0xff]  ;;  %v150_v15 = vld [vmem:[%s271_s2] ss:$0 sm:$0xff]  ;;  %s205_s25 = smov [#allocation3]  }
   0x5   :  { %171 = vmatpush3.bf16.msra.mxu0 %v168_v3  ;;  %s137_s26 = sshll.u32 %s205_s25, 4  ;;  %s138_s26 = int_to_ptr.vmem [resolvable:$true] %s137_s26 }
   0x6   :  { %173 = vmatprep.subr.bf16.mxu0 %v172_v7  ;;  %s180_s0 = scalar_lea.vmem %s138_s26, 256  ;;  %p185_p1 = scmp.lt.s32.totalorder %s138_s26, %s138_s26 }
   0x7   :  { %p181_p0 = scmp.ne.s32.totalorder %s138_s26, %s180_s0  ;;  %p186_p2 = scmp.lt.s32.totalorder %s180_s0, %s180_s0 }
   0x8   :  { %v23_v9 = vld [vmem:[#allocation2 + $0x8] sm:$0xff] }
   0x9   :  { %175 = vmatpush3.bf16.msra.mxu0 %v172_v7  ;;  %v22_v10 = vld [vmem:[#allocation2] sm:$0xff]  ;;  %p187_p3 = por %p186_p2, %p185_p1 }
   0xb   :  { %p188_p4 = pnand %p187_p3, %p181_p0 }
   0xc   :  { %166 = vmatmul.mubr.msk.f32.vlgmr.msra.gmra.mrb[0].mxu0 %vm19_vm0, %v25_v8 }
  0xdf   :  { %v167_v11 = vpop.f32.mrb[0].mxu0 }
  0xe0   :  { %v113_v12 = vadd.f32 %v167_v11, %v23_v9  ;;  %v103_v13 = vpop.f32.mrb[1].mxu0 }
  0xe1   :  { %v112_v14 = vadd.f32 %v103_v13, %v22_v10 }
  0xe2   :  { %115 = vst.msk [vmem:[#allocation2 + $0x8] sm:$0xff] %vm19_vm0, %v113_v12 }
  0xe3   :  { %114 = vst.msk [vmem:[#allocation2] sm:$0xff] %vm19_vm0, %v112_v14 }
  0xe9   :  { %v120_v16 = vld [vmem:[#allocation2 + $0x8] sm:$0xff] }
  0xea   :  { %v119_v17 = vld [vmem:[#allocation2] sm:$0xff]  ;;  %v129_v18 = vadd.f32 %v150_v15, %v120_v16 }
  0xeb   :  { %v128_v19 = vadd.f32 %v150_v15, %v119_v17 }
  0xec   :  { %131 = vst.msk [vmem:[#allocation3 + $0x8] sm:$0xff] %vm19_vm0, %v129_v18 }
  0xed   :  { %130 = vst.msk [vmem:[#allocation3] sm:$0xff] %vm19_vm0, %v128_v19 }
  0xee   :  { %191 = shalt.err (!%p188_p4)
}
  0xef   :  { %s192_s28 = scalar_lea.hbm %s272_s3, 256 }
  0xf0   :  { %p193_p5 = scmp.ne.s32.totalorder %s272_s3, %s192_s28  ;;  %p196_p6 = scmp.lt.u32.totalorder %s192_s28, %s272_s3 }
  0xf2   :  { %p198_p7 = pnand %p196_p6, %p193_p5 }
  0xf4   :  { %201 = shalt.err (!%p198_p7)
}
  0xf5   :  { %s206_s6 = smov 128   ;;  %s207_s7 = smov 8  }
  0xf6   :  { %143 = dma.vmem_to_hbm [thread:$0]  %s138_s26, 256, %s272_s3, [#allocation4], %s206_s6, %s206_s6, %s207_s7  }
  0xf7   :  { %202 = dma.done.wait [#allocation4], 256  }
  0xf8   :  { %203 = vsyncadd [#allocation4], 4294967040 }
  0xf9   :  { %147 = vsyncpa [#allocation4], 1 }

</bundles_post_ra>
